<compile_context>
chip_gen: v7x
topology: tpu7x:2x2x1
jax: 0.10.0
libtpu: 0.0.40
codegen_flags: <defaults>
</compile_context>

<pallas_src>
import math
import jax
import jax.numpy as jnp
from jax.experimental import pallas as pl
from jax.experimental.pallas import tpu as pltpu

# ----------------------------- model config ---------------------------------
D_MODEL = 32
N_HEADS = 4
D_K = D_MODEL // N_HEADS
SEQ_LEN = 8
BATCH = 2
ATTN_SCALE = 1.0 / math.sqrt(D_K)


# ------------------------------ Pallas kernel --------------------------------
def mha_kernel(x_ref, wqkv_ref, wo_ref, bo_ref, out_ref, attn_ref):
    # x_ref   : (S, B, D)   native module layout, no wrapper transpose
    # wqkv_ref: (D, 3D)     packed [Wq | Wk | Wv], stored (in, out)
    # wo_ref  : (D, D)      output projection, stored (in, out)
    # bo_ref  : (1, D)
    # out_ref : (S, B, D)
    # attn_ref: (B, H, S, S)
    S, B, D, H, dk = SEQ_LEN, BATCH, D_MODEL, N_HEADS, D_K

    x = x_ref[...]                                            # (S, B, D)

    # Flatten tokens batch-major (row = b*S + s) so all projections run on one
    # (B*S, D) = (16, 32) matrix.
    tok = jnp.concatenate([x[:, b, :] for b in range(B)], axis=0)        # (B*S, D)

    # Fused Q/K/V projection: a single (16, 32) @ (32, 96) MXU matmul.
    qkv = jnp.dot(tok, wqkv_ref[...], preferred_element_type=jnp.float32)  # (B*S, 3D)

    # Re-stack into a (B*H, S, dk) batch so attention is one batched dot_general.
    def split_heads(col0):
        return jnp.stack(
            [qkv[b * S:(b + 1) * S, col0 + h * dk: col0 + (h + 1) * dk]
             for b in range(B) for h in range(H)],
            axis=0)                                                       # (B*H, S, dk)

    q = split_heads(0)
    k = split_heads(D)
    v = split_heads(2 * D)

    # Scaled dot-product attention, batched over n = (batch, head).
    scores = jnp.einsum("nqd,nkd->nqk", q, k,
                        preferred_element_type=jnp.float32) * ATTN_SCALE  # (B*H, S, S)
    scores = jnp.clip(scores, -65000.0, 65000.0)        # torch.clamp parity
    # TODO(synk): optional `mask` / `key_padding_mask` inputs not implemented
    # (the reference usage passes None for both).
    scores = scores - jnp.max(scores, axis=-1, keepdims=True)
    p = jnp.exp(scores)
    p = p / jnp.sum(p, axis=-1, keepdims=True)          # dropout(p): identity (eval)
    attn_ref[...] = p.reshape(B, H, S, S)

    ctx = jnp.einsum("nqk,nkd->nqd", p, v,
                     preferred_element_type=jnp.float32)                  # (B*H, S, dk)

    # Merge heads back to (B*S, D) token rows.
    attended = jnp.concatenate(
        [jnp.concatenate([ctx[b * H + h] for h in range(H)], axis=-1)
         for b in range(B)],
        axis=0)                                                           # (B*S, D)

    # Output projection (with bias) on the flattened token matrix.
    out_tok = jnp.dot(attended, wo_ref[...],
                      preferred_element_type=jnp.float32) + bo_ref[...]   # (B*S, D)

    # Single full store in the module's native (S, B, D) layout.
    out_ref[...] = jnp.stack([out_tok[b * S:(b + 1) * S, :] for b in range(B)],
                             axis=1)                                      # (S, B, D)


# ------------------------------ wrapper --------------------------------------
def mha_forward(x_sbd, wqkv, wo, bo):
    """x_sbd: (seq_len, batch, d_model) used as query=key=value.

    Returns (output (S, B, D), attention_weights (B, H, S, S))."""
    S, B, D = x_sbd.shape
    H = N_HEADS
    out_shape = (
        jax.ShapeDtypeStruct((S, B, D), jnp.float32),
        jax.ShapeDtypeStruct((B, H, S, S), jnp.float32),
    )
    in_specs = [
        pl.BlockSpec((S, B, D), lambda i: (0, 0, 0)),        # x (full, native layout)
        pl.BlockSpec((D, 3 * D), lambda i: (0, 0)),          # packed Wqkv
        pl.BlockSpec((D, D), lambda i: (0, 0)),              # Wo
        pl.BlockSpec((1, D), lambda i: (0, 0)),              # bo
    ]
    out_specs = (
        pl.BlockSpec((S, B, D), lambda i: (0, 0, 0)),
        pl.BlockSpec((B, H, S, S), lambda i: (0, 0, 0, 0)),
    )
    return pl.pallas_call(
        mha_kernel,
        grid=(1,),                       # single step: whole problem fits in VMEM
        in_specs=in_specs,
        out_specs=out_specs,
        out_shape=out_shape,
        compiler_params=pltpu.CompilerParams(dimension_semantics=("arbitrary",)),
    )(x_sbd, wqkv, wo, bo)


# --------------------------- pure-JAX reference -------------------------------
def mha_reference(x, wq, wk, wv, wo, bo):
    S, B, D = x.shape
    q, k, v = x @ wq, x @ wk, x @ wv                          # (S, B, D)

    def split(t):  # (S, B, D) -> (B, H, S, dk), mirroring the torch view/transposes
        return jnp.transpose(t.reshape(S, B, N_HEADS, D_K), (1, 2, 0, 3))

    qh, kh, vh = split(q), split(k), split(v)
    scores = jnp.einsum("bhqd,bhkd->bhqk", qh, kh) * ATTN_SCALE
    scores = jnp.clip(scores, -65000.0, 65000.0)
    attn = jax.nn.softmax(scores, axis=-1)
    ctx = jnp.einsum("bhqk,bhkd->bhqd", attn, vh)             # (B, H, S, dk)
    ctx = jnp.transpose(ctx, (2, 0, 1, 3)).reshape(S, B, D)
    out = ctx @ wo + bo
    return out, attn


# ------------------------------- main -----------------------------------------
if __name__ == "__main__":
    key = jax.random.PRNGKey(0)
    k_wq, k_wk, k_wv, k_wo, k_bo, k_x = jax.random.split(key, 6)
    D = D_MODEL

    # Linear weights stored (in, out), i.e. pre-transposed vs PyTorch's (out, in).
    wq = jax.random.normal(k_wq, (D, D), jnp.float32) * 0.05
    wk = jax.random.normal(k_wk, (D, D), jnp.float32) * 0.05
    wv = jax.random.normal(k_wv, (D, D), jnp.float32) * 0.05
    wo = jax.random.normal(k_wo, (D, D), jnp.float32) * 0.05
    bo = jax.random.normal(k_bo, (1, D), jnp.float32) * 0.05

    # One-time parameter prep (outside the hot path): pack Q/K/V weights.
    wqkv = jnp.concatenate([wq, wk, wv], axis=1)              # (D, 3D)

    x = jax.random.normal(k_x, (SEQ_LEN, BATCH, D_MODEL), jnp.float32)

    out, attn = mha_forward(x, wqkv, wo, bo)
    out = jax.block_until_ready(out)
    attn = jax.block_until_ready(attn)

    ref_out, ref_attn = mha_reference(x, wq, wk, wv, wo, bo)

    assert out.shape == (SEQ_LEN, BATCH, D_MODEL)
    assert attn.shape == (BATCH, N_HEADS, SEQ_LEN, SEQ_LEN)
    assert jnp.allclose(out, ref_out, atol=1e-4, rtol=1e-4), "output mismatch vs reference"
    assert jnp.allclose(attn, ref_attn, atol=1e-4, rtol=1e-4), "attn weights mismatch vs reference"

    print("KERNEL_OK")
</pallas_src>

<mosaic_0001>
module attributes {stable_mosaic.version = 11 : i64} {
  func.func @mha_kernel(%arg0: i32, %arg1: memref<8x2x32xf32, #tpu.memory_space<vmem>>, %arg2: memref<32x96xf32, #tpu.memory_space<vmem>>, %arg3: memref<32x32xf32, #tpu.memory_space<vmem>>, %arg4: memref<1x32xf32, #tpu.memory_space<vmem>>, %arg5: memref<8x2x32xf32, #tpu.memory_space<vmem>>, %arg6: memref<2x4x8x8xf32, #tpu.memory_space<vmem>>) attributes {dimension_semantics = [#tpu.dimension_semantics<arbitrary>], iteration_bounds = array<i64: 1>, scalar_prefetch = 0 : i64, scratch_operands = 0 : i64, tpu.core_type = #tpu.core_type<tc>, window_params = [{pipeline_mode = #tpu.pipeline_mode<synchronous>, transform_indices = @transform_0, window_bounds = array<i64: 8, 2, 32>}, {pipeline_mode = #tpu.pipeline_mode<synchronous>, transform_indices = @transform_1, window_bounds = array<i64: 32, 96>}, {pipeline_mode = #tpu.pipeline_mode<synchronous>, transform_indices = @transform_2, window_bounds = array<i64: 32, 32>}, {pipeline_mode = #tpu.pipeline_mode<synchronous>, transform_indices = @transform_3, window_bounds = array<i64: 1, 32>}, {pipeline_mode = #tpu.pipeline_mode<synchronous>, transform_indices = @transform_4, window_bounds = array<i64: 8, 2, 32>}, {pipeline_mode = #tpu.pipeline_mode<synchronous>, transform_indices = @transform_5, window_bounds = array<i64: 2, 4, 8, 8>}]} {
    %c0 = arith.constant 0 : index
    %c0_0 = arith.constant 0 : index
    %c0_1 = arith.constant 0 : index
    %0 = vector.load %arg1[%c0, %c0_0, %c0_1] : memref<8x2x32xf32, #tpu.memory_space<vmem>>, vector<8x2x32xf32>
    %1 = vector.extract_strided_slice %0 {offsets = [0, 0, 0], sizes = [8, 1, 32], strides = [1, 1, 1]} : vector<8x2x32xf32> to vector<8x1x32xf32>
    %2 = vector.shape_cast %1 : vector<8x1x32xf32> to vector<8x32xf32>
    %3 = vector.extract_strided_slice %0 {offsets = [0, 1, 0], sizes = [8, 1, 32], strides = [1, 1, 1]} : vector<8x2x32xf32> to vector<8x1x32xf32>
    %4 = vector.shape_cast %3 : vector<8x1x32xf32> to vector<8x32xf32>
    %5 = tpu.concatenate %2, %4 in 0 : vector<8x32xf32>, vector<8x32xf32> -> vector<16x32xf32>
    %c0_2 = arith.constant 0 : index
    %c0_3 = arith.constant 0 : index
    %6 = vector.load %arg2[%c0_2, %c0_3] : memref<32x96xf32, #tpu.memory_space<vmem>>, vector<32x96xf32>
    %cst = arith.constant dense<0.000000e+00> : vector<16x96xf32>
    %7 = tpu.matmul %5, %6, %cst {dimension_numbers = #tpu.dot_dimension_numbers<[1], [0], [0], [1], [0, 0, 1, 1], [], []>} : vector<16x32xf32>, vector<32x96xf32>, vector<16x96xf32> -> vector<16x96xf32>
    %8 = vector.extract_strided_slice %7 {offsets = [0, 0], sizes = [8, 8], strides = [1, 1]} : vector<16x96xf32> to vector<8x8xf32>
    %9 = vector.extract_strided_slice %7 {offsets = [0, 8], sizes = [8, 8], strides = [1, 1]} : vector<16x96xf32> to vector<8x8xf32>
    %10 = vector.extract_strided_slice %7 {offsets = [0, 16], sizes = [8, 8], strides = [1, 1]} : vector<16x96xf32> to vector<8x8xf32>
    %11 = vector.extract_strided_slice %7 {offsets = [0, 24], sizes = [8, 8], strides = [1, 1]} : vector<16x96xf32> to vector<8x8xf32>
    %12 = vector.extract_strided_slice %7 {offsets = [8, 0], sizes = [8, 8], strides = [1, 1]} : vector<16x96xf32> to vector<8x8xf32>
    %13 = vector.extract_strided_slice %7 {offsets = [8, 8], sizes = [8, 8], strides = [1, 1]} : vector<16x96xf32> to vector<8x8xf32>
    %14 = vector.extract_strided_slice %7 {offsets = [8, 16], sizes = [8, 8], strides = [1, 1]} : vector<16x96xf32> to vector<8x8xf32>
    %15 = vector.extract_strided_slice %7 {offsets = [8, 24], sizes = [8, 8], strides = [1, 1]} : vector<16x96xf32> to vector<8x8xf32>
    %16 = vector.shape_cast %8 : vector<8x8xf32> to vector<1x8x8xf32>
    %17 = vector.shape_cast %9 : vector<8x8xf32> to vector<1x8x8xf32>
    %18 = vector.shape_cast %10 : vector<8x8xf32> to vector<1x8x8xf32>
    %19 = vector.shape_cast %11 : vector<8x8xf32> to vector<1x8x8xf32>
    %20 = vector.shape_cast %12 : vector<8x8xf32> to vector<1x8x8xf32>
    %21 = vector.shape_cast %13 : vector<8x8xf32> to vector<1x8x8xf32>
    %22 = vector.shape_cast %14 : vector<8x8xf32> to vector<1x8x8xf32>
    %23 = vector.shape_cast %15 : vector<8x8xf32> to vector<1x8x8xf32>
    %24 = tpu.concatenate %16, %17, %18, %19, %20, %21, %22, %23 in 0 : vector<1x8x8xf32>, vector<1x8x8xf32>, vector<1x8x8xf32>, vector<1x8x8xf32>, vector<1x8x8xf32>, vector<1x8x8xf32>, vector<1x8x8xf32>, vector<1x8x8xf32> -> vector<8x8x8xf32>
    %25 = vector.extract_strided_slice %7 {offsets = [0, 32], sizes = [8, 8], strides = [1, 1]} : vector<16x96xf32> to vector<8x8xf32>
    %26 = vector.extract_strided_slice %7 {offsets = [0, 40], sizes = [8, 8], strides = [1, 1]} : vector<16x96xf32> to vector<8x8xf32>
    %27 = vector.extract_strided_slice %7 {offsets = [0, 48], sizes = [8, 8], strides = [1, 1]} : vector<16x96xf32> to vector<8x8xf32>
    %28 = vector.extract_strided_slice %7 {offsets = [0, 56], sizes = [8, 8], strides = [1, 1]} : vector<16x96xf32> to vector<8x8xf32>
    %29 = vector.extract_strided_slice %7 {offsets = [8, 32], sizes = [8, 8], strides = [1, 1]} : vector<16x96xf32> to vector<8x8xf32>
    %30 = vector.extract_strided_slice %7 {offsets = [8, 40], sizes = [8, 8], strides = [1, 1]} : vector<16x96xf32> to vector<8x8xf32>
    %31 = vector.extract_strided_slice %7 {offsets = [8, 48], sizes = [8, 8], strides = [1, 1]} : vector<16x96xf32> to vector<8x8xf32>
    %32 = vector.extract_strided_slice %7 {offsets = [8, 56], sizes = [8, 8], strides = [1, 1]} : vector<16x96xf32> to vector<8x8xf32>
    %33 = vector.shape_cast %25 : vector<8x8xf32> to vector<1x8x8xf32>
    %34 = vector.shape_cast %26 : vector<8x8xf32> to vector<1x8x8xf32>
    %35 = vector.shape_cast %27 : vector<8x8xf32> to vector<1x8x8xf32>
    %36 = vector.shape_cast %28 : vector<8x8xf32> to vector<1x8x8xf32>
    %37 = vector.shape_cast %29 : vector<8x8xf32> to vector<1x8x8xf32>
    %38 = vector.shape_cast %30 : vector<8x8xf32> to vector<1x8x8xf32>
    %39 = vector.shape_cast %31 : vector<8x8xf32> to vector<1x8x8xf32>
    %40 = vector.shape_cast %32 : vector<8x8xf32> to vector<1x8x8xf32>
    %41 = tpu.concatenate %33, %34, %35, %36, %37, %38, %39, %40 in 0 : vector<1x8x8xf32>, vector<1x8x8xf32>, vector<1x8x8xf32>, vector<1x8x8xf32>, vector<1x8x8xf32>, vector<1x8x8xf32>, vector<1x8x8xf32>, vector<1x8x8xf32> -> vector<8x8x8xf32>
    %42 = vector.extract_strided_slice %7 {offsets = [0, 64], sizes = [8, 8], strides = [1, 1]} : vector<16x96xf32> to vector<8x8xf32>
    %43 = vector.extract_strided_slice %7 {offsets = [0, 72], sizes = [8, 8], strides = [1, 1]} : vector<16x96xf32> to vector<8x8xf32>
    %44 = vector.extract_strided_slice %7 {offsets = [0, 80], sizes = [8, 8], strides = [1, 1]} : vector<16x96xf32> to vector<8x8xf32>
    %45 = vector.extract_strided_slice %7 {offsets = [0, 88], sizes = [8, 8], strides = [1, 1]} : vector<16x96xf32> to vector<8x8xf32>
    %46 = vector.extract_strided_slice %7 {offsets = [8, 64], sizes = [8, 8], strides = [1, 1]} : vector<16x96xf32> to vector<8x8xf32>
    %47 = vector.extract_strided_slice %7 {offsets = [8, 72], sizes = [8, 8], strides = [1, 1]} : vector<16x96xf32> to vector<8x8xf32>
    %48 = vector.extract_strided_slice %7 {offsets = [8, 80], sizes = [8, 8], strides = [1, 1]} : vector<16x96xf32> to vector<8x8xf32>
    %49 = vector.extract_strided_slice %7 {offsets = [8, 88], sizes = [8, 8], strides = [1, 1]} : vector<16x96xf32> to vector<8x8xf32>
    %50 = vector.shape_cast %42 : vector<8x8xf32> to vector<1x8x8xf32>
    %51 = vector.shape_cast %43 : vector<8x8xf32> to vector<1x8x8xf32>
    %52 = vector.shape_cast %44 : vector<8x8xf32> to vector<1x8x8xf32>
    %53 = vector.shape_cast %45 : vector<8x8xf32> to vector<1x8x8xf32>
    %54 = vector.shape_cast %46 : vector<8x8xf32> to vector<1x8x8xf32>
    %55 = vector.shape_cast %47 : vector<8x8xf32> to vector<1x8x8xf32>
    %56 = vector.shape_cast %48 : vector<8x8xf32> to vector<1x8x8xf32>
    %57 = vector.shape_cast %49 : vector<8x8xf32> to vector<1x8x8xf32>
    %58 = tpu.concatenate %50, %51, %52, %53, %54, %55, %56, %57 in 0 : vector<1x8x8xf32>, vector<1x8x8xf32>, vector<1x8x8xf32>, vector<1x8x8xf32>, vector<1x8x8xf32>, vector<1x8x8xf32>, vector<1x8x8xf32>, vector<1x8x8xf32> -> vector<8x8x8xf32>
    "tpu.trace_start"() <{level = 10 : i32, message = "nqd,nkd->nqk"}> : () -> ()
    %cst_4 = arith.constant dense<0.000000e+00> : vector<8x8x8xf32>
    %59 = tpu.matmul %24, %41, %cst_4 {dimension_numbers = #tpu.dot_dimension_numbers<[2], [2], [1], [1], [0, 0, 0, 1, 1, 1], [0], [0]>} : vector<8x8x8xf32>, vector<8x8x8xf32>, vector<8x8x8xf32> -> vector<8x8x8xf32>
    "tpu.trace_stop"() : () -> ()
    %cst_5 = arith.constant 0.353553385 : f32
    %60 = vector.broadcast %cst_5 : f32 to vector<8x8x8xf32>
    %61 = arith.mulf %59, %60 : vector<8x8x8xf32>
    %cst_6 = arith.constant -6.500000e+04 : f32
    %cst_7 = arith.constant 6.500000e+04 : f32
    %62 = vector.broadcast %cst_6 : f32 to vector<8x8x8xf32>
    %63 = arith.maximumf %62, %61 : vector<8x8x8xf32>
    %64 = vector.broadcast %cst_7 : f32 to vector<8x8x8xf32>
    %65 = arith.minimumf %64, %63 : vector<8x8x8xf32>
    %cst_8 = arith.constant dense<0xFF800000> : vector<8x8xf32>
    %66 = vector.multi_reduction <maximumf>, %65, %cst_8 [2] : vector<8x8x8xf32> to vector<8x8xf32>
    %67 = vector.shape_cast %66 : vector<8x8xf32> to vector<8x8x1xf32>
    %68 = vector.broadcast %67 : vector<8x8x1xf32> to vector<8x8x8xf32>
    %69 = arith.subf %65, %68 : vector<8x8x8xf32>
    %70 = math.exp %69 : vector<8x8x8xf32>
    %cst_9 = arith.constant dense<0.000000e+00> : vector<8x8xf32>
    %71 = vector.multi_reduction <add>, %70, %cst_9 [2] : vector<8x8x8xf32> to vector<8x8xf32>
    %72 = vector.shape_cast %71 : vector<8x8xf32> to vector<8x8x1xf32>
    %73 = vector.broadcast %72 : vector<8x8x1xf32> to vector<8x8x8xf32>
    %74 = arith.divf %70, %73 : vector<8x8x8xf32>
    %75 = vector.shape_cast %74 : vector<8x8x8xf32> to vector<2x4x8x8xf32>
    %c0_10 = arith.constant 0 : index
    %c0_11 = arith.constant 0 : index
    %c0_12 = arith.constant 0 : index
    %c0_13 = arith.constant 0 : index
    %76 = vector.load %arg6[%c0_10, %c0_11, %c0_12, %c0_13] : memref<2x4x8x8xf32, #tpu.memory_space<vmem>>, vector<2x4x8x8xf32>
    tpu.vector_store %arg6[%c0_10, %c0_11, %c0_12, %c0_13], %75 {strides = array<i32>} : memref<2x4x8x8xf32, #tpu.memory_space<vmem>>, vector<2x4x8x8xf32>,
    "tpu.trace_start"() <{level = 10 : i32, message = "nqk,nkd->nqd"}> : () -> ()
    %cst_14 = arith.constant dense<0.000000e+00> : vector<8x8x8xf32>
    %77 = tpu.matmul %74, %58, %cst_14 {dimension_numbers = #tpu.dot_dimension_numbers<[2], [1], [1], [2], [0, 0, 0, 1, 1, 2], [0], [0]>} : vector<8x8x8xf32>, vector<8x8x8xf32>, vector<8x8x8xf32> -> vector<8x8x8xf32>
    "tpu.trace_stop"() : () -> ()
    %78 = vector.extract_strided_slice %77 {offsets = [0, 0, 0], sizes = [1, 8, 8], strides = [1, 1, 1]} : vector<8x8x8xf32> to vector<1x8x8xf32>
    %79 = vector.shape_cast %78 : vector<1x8x8xf32> to vector<8x8xf32>
    %80 = vector.extract_strided_slice %77 {offsets = [1, 0, 0], sizes = [1, 8, 8], strides = [1, 1, 1]} : vector<8x8x8xf32> to vector<1x8x8xf32>
    %81 = vector.shape_cast %80 : vector<1x8x8xf32> to vector<8x8xf32>
    %82 = vector.extract_strided_slice %77 {offsets = [2, 0, 0], sizes = [1, 8, 8], strides = [1, 1, 1]} : vector<8x8x8xf32> to vector<1x8x8xf32>
    %83 = vector.shape_cast %82 : vector<1x8x8xf32> to vector<8x8xf32>
    %84 = vector.extract_strided_slice %77 {offsets = [3, 0, 0], sizes = [1, 8, 8], strides = [1, 1, 1]} : vector<8x8x8xf32> to vector<1x8x8xf32>
    %85 = vector.shape_cast %84 : vector<1x8x8xf32> to vector<8x8xf32>
    %86 = tpu.concatenate %79, %81, %83, %85 in 1 : vector<8x8xf32>, vector<8x8xf32>, vector<8x8xf32>, vector<8x8xf32> -> vector<8x32xf32>
    %87 = vector.extract_strided_slice %77 {offsets = [4, 0, 0], sizes = [1, 8, 8], strides = [1, 1, 1]} : vector<8x8x8xf32> to vector<1x8x8xf32>
    %88 = vector.shape_cast %87 : vector<1x8x8xf32> to vector<8x8xf32>
    %89 = vector.extract_strided_slice %77 {offsets = [5, 0, 0], sizes = [1, 8, 8], strides = [1, 1, 1]} : vector<8x8x8xf32> to vector<1x8x8xf32>
    %90 = vector.shape_cast %89 : vector<1x8x8xf32> to vector<8x8xf32>
    %91 = vector.extract_strided_slice %77 {offsets = [6, 0, 0], sizes = [1, 8, 8], strides = [1, 1, 1]} : vector<8x8x8xf32> to vector<1x8x8xf32>
    %92 = vector.shape_cast %91 : vector<1x8x8xf32> to vector<8x8xf32>
    %93 = vector.extract_strided_slice %77 {offsets = [7, 0, 0], sizes = [1, 8, 8], strides = [1, 1, 1]} : vector<8x8x8xf32> to vector<1x8x8xf32>
    %94 = vector.shape_cast %93 : vector<1x8x8xf32> to vector<8x8xf32>
    %95 = tpu.concatenate %88, %90, %92, %94 in 1 : vector<8x8xf32>, vector<8x8xf32>, vector<8x8xf32>, vector<8x8xf32> -> vector<8x32xf32>
    %96 = tpu.concatenate %86, %95 in 0 : vector<8x32xf32>, vector<8x32xf32> -> vector<16x32xf32>
    %c0_15 = arith.constant 0 : index
    %c0_16 = arith.constant 0 : index
    %97 = vector.load %arg3[%c0_15, %c0_16] : memref<32x32xf32, #tpu.memory_space<vmem>>, vector<32x32xf32>
    %cst_17 = arith.constant dense<0.000000e+00> : vector<16x32xf32>
    %98 = tpu.matmul %96, %97, %cst_17 {dimension_numbers = #tpu.dot_dimension_numbers<[1], [0], [0], [1], [0, 0, 1, 1], [], []>} : vector<16x32xf32>, vector<32x32xf32>, vector<16x32xf32> -> vector<16x32xf32>
    %c0_18 = arith.constant 0 : index
    %c0_19 = arith.constant 0 : index
    %99 = vector.load %arg4[%c0_18, %c0_19] : memref<1x32xf32, #tpu.memory_space<vmem>>, vector<1x32xf32>
    %100 = vector.broadcast %99 : vector<1x32xf32> to vector<16x32xf32>
    %101 = arith.addf %98, %100 : vector<16x32xf32>
    %102 = vector.extract_strided_slice %101 {offsets = [0, 0], sizes = [8, 32], strides = [1, 1]} : vector<16x32xf32> to vector<8x32xf32>
    %103 = vector.extract_strided_slice %101 {offsets = [8, 0], sizes = [8, 32], strides = [1, 1]} : vector<16x32xf32> to vector<8x32xf32>
    %104 = vector.shape_cast %102 : vector<8x32xf32> to vector<8x1x32xf32>
    %105 = vector.shape_cast %103 : vector<8x32xf32> to vector<8x1x32xf32>
    %106 = tpu.concatenate %104, %105 in 1 : vector<8x1x32xf32>, vector<8x1x32xf32> -> vector<8x2x32xf32>
    %c0_20 = arith.constant 0 : index
    %c0_21 = arith.constant 0 : index
    %c0_22 = arith.constant 0 : index
    %107 = vector.load %arg5[%c0_20, %c0_21, %c0_22] : memref<8x2x32xf32, #tpu.memory_space<vmem>>, vector<8x2x32xf32>
    tpu.vector_store %arg5[%c0_20, %c0_21, %c0_22], %106 {strides = array<i32>} : memref<8x2x32xf32, #tpu.memory_space<vmem>>, vector<8x2x32xf32>,
    return
  }
  func.func @transform_0(%arg0: i32) -> (i32, i32, i32) {
    %c0_i32 = arith.constant 0 : i32
    %c0_i32_0 = arith.constant 0 : i32
    %c0_i32_1 = arith.constant 0 : i32
    %c0_i32_2 = arith.constant 0 : i32
    return %c0_i32, %c0_i32_0, %c0_i32_1 : i32, i32, i32
  }
  func.func @transform_1(%arg0: i32) -> (i32, i32) {
    %c0_i32 = arith.constant 0 : i32
    %c0_i32_0 = arith.constant 0 : i32
    %c0_i32_1 = arith.constant 0 : i32
    return %c0_i32, %c0_i32_0 : i32, i32
  }
  func.func @transform_2(%arg0: i32) -> (i32, i32) {
    %c0_i32 = arith.constant 0 : i32
    %c0_i32_0 = arith.constant 0 : i32
    %c0_i32_1 = arith.constant 0 : i32
    return %c0_i32, %c0_i32_0 : i32, i32
  }
  func.func @transform_3(%arg0: i32) -> (i32, i32) {
    %c0_i32 = arith.constant 0 : i32
    %c0_i32_0 = arith.constant 0 : i32
    %c0_i32_1 = arith.constant 0 : i32
    return %c0_i32, %c0_i32_0 : i32, i32
  }
  func.func @transform_4(%arg0: i32) -> (i32, i32, i32) {
    %c0_i32 = arith.constant 0 : i32
    %c0_i32_0 = arith.constant 0 : i32
    %c0_i32_1 = arith.constant 0 : i32
    %c0_i32_2 = arith.constant 0 : i32
    return %c0_i32, %c0_i32_0, %c0_i32_1 : i32, i32, i32
  }
  func.func @transform_5(%arg0: i32) -> (i32, i32, i32, i32) {
    %c0_i32 = arith.constant 0 : i32
    %c0_i32_0 = arith.constant 0 : i32
    %c0_i32_1 = arith.constant 0 : i32
    %c0_i32_2 = arith.constant 0 : i32
    %c0_i32_3 = arith.constant 0 : i32
    return %c0_i32, %c0_i32_0, %c0_i32_1, %c0_i32_2 : i32, i32, i32, i32
  }
}

</mosaic_0001>

<bundles_post_ra>
// kernel: tpu_custom_call.1
= control target key start
LH: loop header
LB: loop body
LE: loop exit
PB: predicated region body
PF: predicated region fallthrough
CT: control target
= control target key end

     0   :  { %11 = vsyncpa [#allocation3], 0  ;;  %s2564_s0 = inlined_call_operand.hbm [shape: f32[8,2,32], index: 0, kind: input, shape index: {}]   ;;  %s2565_s1 = inlined_call_operand.hbm [shape: f32[32,96], index: 1, kind: input, shape index: {}]   ;;  %s2566_s2 = inlined_call_operand.hbm [shape: f32[32,32], index: 2, kind: input, shape index: {}]   ;;  %s2567_s3 = inlined_call_operand.vmem [shape: f32[1,32], index: 3, kind: input, shape index: {}]   ;;  %s2568_s4 = inlined_call_operand.hbm [shape: f32[8,2,32], index: 4, kind: output, shape index: {0}]   ;;  %s2569_s5 = inlined_call_operand.hbm [shape: f32[2,4,8,8], index: 5, kind: output, shape index: {1}]  }
   0x1   :  { %12 = vsyncpa [#allocation6], 0 }
   0x2   :  { %13 = vsyncpa [#allocation4], 0 }
   0x3   :  { %14 = vsyncpa [#allocation10], 0  ;;  %s2240_s18 = smov [#allocation5]   ;;  %s2122_s22 = scalar_lea.hbm %s2565_s1, 512 }
   0x4   :  { %s32_s19 = sshll.u32 %s2240_s18, 4  ;;  %p2123_p0 = scmp.ne.s32.totalorder %s2565_s1, %s2122_s22  ;;  %s33_s19 = int_to_ptr.vmem [resolvable:$true] %s32_s19 }
   0x5   :  { %p2126_p1 = scmp.lt.u32.totalorder %s2122_s22, %s2565_s1 }
   0x7   :  { %p2128_p2 = pnand %p2126_p1, %p2123_p0 }
   0x9   :  { %2131 = shalt.err (!%p2128_p2)
}
   0xa   :  { %s2132_s27 = scalar_lea.vmem %s33_s19, 512  ;;  %p2137_p4 = scmp.lt.s32.totalorder %s33_s19, %s33_s19 }
   0xb   :  { %p2133_p3 = scmp.ne.s32.totalorder %s33_s19, %s2132_s27  ;;  %p2138_p5 = scmp.lt.s32.totalorder %s2132_s27, %s2132_s27 }
   0xd   :  { %p2139_p6 = por %p2138_p5, %p2137_p4 }
   0xf   :  { %p2140_p7 = pnand %p2139_p6, %p2133_p3 }
  0x11   :  { %2143 = shalt.err (!%p2140_p7)
}
  0x12   :  { %s2241_s28 = smov 128   ;;  %s2242_s29 = smov 8  }
  0x13   :  { %38 = dma.hbm_to_vmem [thread:$0]  %s2565_s1, 512, %s33_s19, [#allocation6], %s2241_s28, %s2241_s28, %s2242_s29  }
  0x14   :  { %s2243_s7 = smov [#allocation2]   ;;  %s2144_s11 = scalar_lea.hbm %s2564_s0, 256 }
  0x15   :  { %s20_s8 = sshll.u32 %s2243_s7, 4  ;;  %p2145_p8 = scmp.ne.s32.totalorder %s2564_s0, %s2144_s11  ;;  %s21_s8 = int_to_ptr.vmem [resolvable:$true] %s20_s8 }
  0x16   :  { %p2148_p9 = scmp.lt.u32.totalorder %s2144_s11, %s2564_s0 }
  0x18   :  { %p2150_p10 = pnand %p2148_p9, %p2145_p8 }
  0x1a   :  { %2153 = shalt.err (!%p2150_p10)
}
  0x1b   :  { %s2154_s16 = scalar_lea.vmem %s21_s8, 256  ;;  %p2159_p12 = scmp.lt.s32.totalorder %s21_s8, %s21_s8 }
  0x1c   :  { %p2155_p11 = scmp.ne.s32.totalorder %s21_s8, %s2154_s16  ;;  %p2160_p13 = scmp.lt.s32.totalorder %s2154_s16, %s2154_s16 }
  0x1e   :  { %p2161_p0 = por %p2160_p13, %p2159_p12 }
  0x20   :  { %p2162_p1 = pnand %p2161_p0, %p2155_p11 }
  0x22   :  { %2165 = shalt.err (!%p2162_p1)
}
  0x23   :  { %s2244_s1 = smov 32   ;;  %s2245_s17 = smov 2  }
  0x24   :  { %26 = dma.hbm_to_vmem [thread:$0]  %s2564_s0, 256, %s21_s8, [#allocation3], %s2244_s1, %s2244_s1, %s2245_s17  }
  0x25   :  { %s2246_s20 = smov [#allocation7]   ;;  %s2166_s24 = scalar_lea.hbm %s2566_s2, 512 }
  0x26   :  { %s44_s21 = sshll.u32 %s2246_s20, 4  ;;  %p2167_p2 = scmp.ne.s32.totalorder %s2566_s2, %s2166_s24  ;;  %s45_s21 = int_to_ptr.vmem [resolvable:$true] %s44_s21 }
  0x27   :  { %p2170_p3 = scmp.lt.u32.totalorder %s2166_s24, %s2566_s2 }
  0x29   :  { %p2172_p4 = pnand %p2170_p3, %p2167_p2 }
  0x2b   :  { %2175 = shalt.err (!%p2172_p4)
}
  0x2c   :  { %s2176_s6 = scalar_lea.vmem %s45_s21, 512  ;;  %p2181_p6 = scmp.lt.s32.totalorder %s45_s21, %s45_s21 }
  0x2d   :  { %p2177_p5 = scmp.ne.s32.totalorder %s45_s21, %s2176_s6  ;;  %p2182_p7 = scmp.lt.s32.totalorder %s2176_s6, %s2176_s6 }
  0x2f   :  { %p2183_p8 = por %p2182_p7, %p2181_p6 }
  0x31   :  { %p2184_p9 = pnand %p2183_p8, %p2177_p5 }
  0x33   :  { %2187 = shalt.err (!%p2184_p9)
}
  0x34   :  { %50 = dma.hbm_to_vmem [thread:$0]  %s2566_s2, 512, %s45_s21, [#allocation6], %s2241_s28, %s2241_s28, %s2242_s29  }
  0x35   :  { %2232 = dma.done.wait [#allocation3], 256  }
  0x36   :  { %2233 = vsyncadd [#allocation3], 4294967040 }
  0x37   :  { %2234 = dma.done.wait [#allocation6], 1024  }
  0x38   :  { %2235 = vsyncadd [#allocation6], 4294966272  ;;  %v113_v0 = vld [vmem:[#allocation5] sm:$0xff]  ;;  %v114_v1 = vld [vmem:[#allocation5 + $0x8] sm:$0xff]  ;;  %vm79_vm0 = vcmask 1041409   ;;  %vm82_vm1 = vcmask 1042434  }
  0x39   :  { %v115_v2 = vld [vmem:[#allocation5 + $0x10] sm:$0xff]  ;;  %v2055_v3 = vpack.c.bf16 %v114_v1, %v113_v0  ;;  %v116_v4 = vld [vmem:[#allocation5 + $0x18] sm:$0xff]  ;;  %vm85_vm2 = vcmask 1043459   ;;  %vm88_vm3 = vcmask 1044484   ;;  %vm91_vm4 = vcmask 1045509   ;;  %s2248_s2 = smov 104  }
  0x3a   :  { %v62_v5 = vld [vmem:[#allocation2] sm:$0x3]  ;;  %v63_v6 = vld [vmem:[#allocation2 + $0x2] sm:$0x3]  ;;  %v2059_v7 = vpack.c.bf16 %v116_v4, %v115_v2  ;;  %v64_v8 = vld [vmem:[#allocation2 + $0x4] sm:$0x3] }
  0x3b   :  { %v65_v9 = vld [vmem:[#allocation2 + $0x6] sm:$0x3]  ;;  %v66_v10 = vld [vmem:[#allocation2 + $0x8] sm:$0x3]  ;;  %2056 = vmatprep.subr.bf16.mxu0 %v2055_v3  ;;  %v67_v11 = vld [vmem:[#allocation2 + $0xa] sm:$0x3] }
  0x3c   :  { %2058 = vmatpush3.bf16.msra.mxu0 %v2055_v3  ;;  %v68_v12 = vld [vmem:[#allocation2 + $0xc] sm:$0x3]  ;;  %v78_v13 = vrot.slane %v63_v6, 7  ;;  %v81_v14 = vrot.slane %v64_v8, 6  ;;  %v84_v15 = vrot.slane %v65_v9, 5  ;;  %v87_v17 = vrot.slane %v66_v10, 4 }
  0x3d   :  { %2060 = vmatprep.subr.bf16.mxu0 %v2059_v7  ;;  %v69_v16 = vld [vmem:[#allocation2 + $0xe] sm:$0x3]  ;;  %v99_v18 = vrot.slane %v62_v5, 1  ;;  %v90_v20 = vrot.slane %v67_v11, 3  ;;  %v101_v21 = vrot.slane %v64_v8, 7  ;;  %v103_v22 = vrot.slane %v65_v9, 6 }
  0x3e   :  { %v80_v19 = vsel %vm79_vm0, %v78_v13, %v62_v5  ;;  %v93_v24 = vrot.slane %v68_v12, 2  ;;  %vm94_vm5 = vcmask 1046534   ;;  %v105_v25 = vrot.slane %v66_v10, 5  ;;  %s2249_s8 = smov 120   ;;  %s2251_s9 = smov 112  }
  0x3f   :  { %v83_v23 = vsel %vm82_vm1, %v81_v14, %v80_v19  ;;  %v96_v27 = vrot.slane %v69_v16, 1  ;;  %v107_v28 = vrot.slane %v67_v11, 4  ;;  %v100_v29 = vsel %vm79_vm0, %v63_v6, %v99_v18  ;;  %s2252_s10 = smov 96   ;;  %s2253_s11 = smov 64  }
  0x40   :  { %2062 = vmatpush3.bf16.msra.mxu0 %v2059_v7  ;;  %v86_v26 = vsel %vm85_vm2, %v84_v15, %v83_v23  ;;  %vm97_vm6 = vcmask 1047559   ;;  %v109_v31 = vrot.slane %v68_v12, 3  ;;  %v102_v32 = vsel %vm82_vm1, %v101_v21, %v100_v29  ;;  %s2254_s12 = smov 16   ;;  %s2255_s13 = smov 24  }
  0x41   :  { %v89_v30 = vsel %vm88_vm3, %v87_v17, %v86_v26  ;;  %v111_v34 = vrot.slane %v69_v16, 2  ;;  %vm117_vm7 = vcmask 261120   ;;  %v104_v35 = vsel %vm85_vm2, %v103_v22, %v102_v32  ;;  %s2256_s14 = smov [#allocation9]  }
  0x42   :  { %v92_v33 = vsel %vm91_vm4, %v90_v20, %v89_v30  ;;  %v106_v37 = vsel %vm88_vm3, %v105_v25, %v104_v35  ;;  %v2247_v42 = vmov 0.0   ;;  %vm2250_vm8 = vmmov 0   ;;  %s1855_s15 = sshll.u32 %s2256_s14, 4  ;;  %s1856_s15 = int_to_ptr.vmem [resolvable:$true] %s1855_s15 }
  0x43   :  { %v95_v36 = vsel %vm94_vm5, %v93_v24, %v92_v33  ;;  %v108_v39 = vsel %vm91_vm4, %v107_v28, %v106_v37  ;;  %1964 = vmatprep.subr.mxu1 %v2247_v42  ;;  %1984 = vmatprep.subr.mxu0 %v2247_v42  ;;  %vm213_vm9 = vcmask 64512   ;;  %vm1561_vm10 = vcmask 130048   ;;  %s2188_s16 = scalar_lea.vmem %s1856_s15, 1024  ;;  %p2193_p11 = scmp.lt.s32.totalorder %s1856_s15, %s1856_s15 }
  0x44   :  { %v98_v38 = vsel %vm97_vm6, %v96_v27, %v95_v36  ;;  %v110_v40 = vsel %vm94_vm5, %v109_v31, %v108_v39  ;;  %1966 = vmatprep.mubr.msk.f32.mxu1 %vm2250_vm8, %v2247_v42  ;;  %vm1563_vm11 = vcmask 195584   ;;  %p2189_p10 = scmp.ne.s32.totalorder %s1856_s15, %s2188_s16  ;;  %p2194_p12 = scmp.lt.s32.totalorder %s2188_s16, %s2188_s16 }
  0x45   :  { %1961 = vmatprep.mubr.msk.f32.mxu0 %vm117_vm7, %v98_v38  ;;  %v112_v41 = vsel %vm97_vm6, %v111_v34, %v110_v40 }
  0x46   :  { %1962 = vmatmul.mubr.msk.f32.vlgmr.msra.gmra.mrb[0].mxu0 %vm117_vm7, %v112_v41  ;;  %p2195_p13 = por %p2194_p12, %p2193_p11 }
  0x47   :  { %1986 = vmatprep.mubr.msk.f32.mxu0 %vm2250_vm8, %v2247_v42 }
  0x48   :  { %p2196_p0 = pnand %p2195_p13, %p2189_p10 }
 0x119   :  { %v2350_v43 = vpop.f32.mrb[0].mxu0 }
 0x11a   :  { %v2352_v44 = vpop.f32.mrb[1].mxu0 }
 0x11b   :  { %202 = vrot.lane.b32.xlu1 %v2352_v44, %s2248_s2  ;;  %198 = vrot.lane.b32.xlu0 %v2352_v44, %s2249_s8 }
 0x11f   :  { %205 = vrot.lane.b32.xlu1 %v2350_v43, %s2249_s8  ;;  %200 = vrot.lane.b32.xlu0 %v2352_v44, %s2251_s9 }
 0x123   :  { %209 = vrot.lane.b32.xlu1 %v2350_v43, %s2248_s2  ;;  %207 = vrot.lane.b32.xlu0 %v2350_v43, %s2251_s9 }
 0x127   :  { %211 = vrot.lane.b32.xlu0 %v2352_v44, %s2252_s10 }
 0x18d   :  { %v2365_v45 = vpop.permute.xlu1 %202  ;;  %v2367_v46 = vpop.permute.xlu0 %198 }
 0x18e   :  { %288 = vrot.lane.b32.xlu1 %v2367_v46, %s2252_s10 }
 0x191   :  { %v2370_v47 = vpop.permute.xlu0 %200  ;;  %v2374_v48 = vpop.permute.xlu1 %205 }
 0x192   :  { %440 = vrot.lane.b32.xlu1 %v2365_v45, %s2252_s10  ;;  %364 = vrot.lane.b32.xlu0 %v2370_v47, %s2252_s10 }
 0x195   :  { %v2376_v49 = vpop.permute.xlu0 %207  ;;  %v2380_v50 = vpop.permute.xlu1 %209 }
 0x196   :  { %592 = vrot.lane.b32.xlu1 %v2374_v48, %s2252_s10  ;;  %516 = vrot.lane.b32.xlu0 %v2350_v43, %s2252_s10 }
 0x199   :  { %v212_v51 = vpop.permute.xlu0 %211 }
 0x19a   :  { %744 = vrot.lane.b32.xlu1 %v2380_v50, %s2252_s10  ;;  %668 = vrot.lane.b32.xlu0 %v2376_v49, %s2252_s10 }
 0x19b   :  { %1965 = vmatpush3.xpose.msk.msra.mxu1 %vm213_vm9, %v212_v51 }
 0x19c   :  { %1969 = vmatprep.subr.mxu1 %v2247_v42 }
 0x19e   :  { %1967 = vmatmul.mubr.msk.f32.vlgmr.msra.gmra.mrb[0].mxu1 %vm213_vm9, %v2352_v44 }
 0x19f   :  { %1971 = vmatprep.mubr.msk.f32.mxu1 %vm2250_vm8, %v2247_v42 }
 0x200   :  { %v289_v52 = vpop.permute.xlu1 %288 }
 0x201   :  { %1970 = vmatpush3.xpose.msk.msra.mxu1 %vm213_vm9, %v289_v52 }
 0x202   :  { %1974 = vmatprep.subr.mxu1 %v2247_v42 }
 0x204   :  { %v441_v53 = vpop.permute.xlu1 %440  ;;  %1972 = vmatmul.mubr.msk.f32.vlgmr.msra.gmra.mrb[2].mxu1 %vm213_vm9, %v2367_v46  ;;  %v365_v54 = vpop.permute.xlu0 %364 }
 0x205   :  { %1975 = vmatpush3.xpose.msk.msra.mxu1 %vm213_vm9, %v365_v54  ;;  %1976 = vmatprep.mubr.msk.f32.mxu1 %vm2250_vm8, %v2247_v42 }
 0x206   :  { %1979 = vmatprep.subr.mxu1 %v2247_v42 }
 0x208   :  { %1977 = vmatmul.mubr.msk.f32.vlgmr.msra.gmra.mrb[4].mxu1 %vm213_vm9, %v2370_v47  ;;  %v517_v55 = vpop.permute.xlu0 %516  ;;  %v593_v56 = vpop.permute.xlu1 %592 }
 0x209   :  { %1980 = vmatpush3.xpose.msk.msra.mxu1 %vm213_vm9, %v441_v53  ;;  %1985 = vmatpush3.xpose.msk.msra.mxu0 %vm213_vm9, %v517_v55 }
 0x20a   :  { %1981 = vmatprep.mubr.msk.f32.mxu1 %vm2250_vm8, %v2247_v42  ;;  %1989 = vmatprep.subr.mxu1 %v2247_v42 }
 0x20b   :  { %1994 = vmatprep.subr.mxu0 %v2247_v42 }
 0x20c   :  { %1982 = vmatmul.mubr.msk.f32.vlgmr.msra.gmra.mrb[6].mxu1 %vm213_vm9, %v2365_v45  ;;  %1987 = vmatmul.mubr.msk.f32.vlgmr.msra.gmra.mrb[2].mxu0 %vm213_vm9, %v2350_v43  ;;  %v669_v57 = vpop.permute.xlu0 %668  ;;  %v745_v58 = vpop.permute.xlu1 %744 }
 0x20d   :  { %1990 = vmatpush3.xpose.msk.msra.mxu1 %vm213_vm9, %v593_v56  ;;  %1995 = vmatpush3.xpose.msk.msra.mxu0 %vm213_vm9, %v669_v57 }
 0x20e   :  { %1991 = vmatprep.mubr.msk.f32.mxu1 %vm2250_vm8, %v2247_v42  ;;  %1996 = vmatprep.mubr.msk.f32.mxu0 %vm2250_vm8, %v2247_v42 }
 0x20f   :  { %1999 = vmatprep.subr.mxu1 %v2247_v42  ;;  %2004 = vmatprep.subr.mxu0 %v2247_v42 }
 0x210   :  { %1992 = vmatmul.mubr.msk.f32.vlgmr.msra.gmra.mrb[8].mxu1 %vm213_vm9, %v2374_v48  ;;  %1997 = vmatmul.mubr.msk.f32.vlgmr.msra.gmra.mrb[4].mxu0 %vm213_vm9, %v2376_v49 }
 0x211   :  { %2000 = vmatpush3.xpose.msk.msra.mxu1 %vm213_vm9, %v745_v58  ;;  %2001 = vmatprep.mubr.msk.f32.mxu1 %vm2250_vm8, %v2247_v42 }
 0x212   :  { %2009 = vmatprep.subr.mxu1 %v2247_v42  ;;  %2006 = vmatprep.mubr.msk.f32.mxu0 %vm2250_vm8, %v2247_v42 }
 0x214   :  { %2002 = vmatmul.mubr.msk.f32.vlgmr.msra.gmra.mrb[10].mxu1 %vm213_vm9, %v2380_v50 }
 0x215   :  { %2011 = vmatprep.mubr.msk.f32.mxu1 %vm2250_vm8, %v2247_v42 }
 0x271   :  { %v284_v59 = vpop.f32.mrb[0].mxu1 }
 0x272   :  { %v820_v60 = vmul.f32 0.35355338, %v284_v59  ;;  %v1968_v61 = vpop.f32.mrb[1].mxu1 }
 0x274   :  { %v1890_v62 = vclamps-f32 %v820_v60, 65000.0 }
 0x276   :  { %v844_v63 = vsel %vm213_vm9, %v1890_v62, -inf }
 0x277   :  { %845 = vmax.xlane.f32.xlu0 %v844_v63 }
 0x2d7   :  { %v360_v0 = vpop.f32.mrb[2].mxu1 }
 0x2d8   :  { %v821_v1 = vmul.f32 0.35355338, %v360_v0  ;;  %v1973_v2 = vpop.f32.mrb[3].mxu1 }
 0x2da   :  { %v1891_v3 = vclamps-f32 %v821_v1, 65000.0 }
 0x2db   :  { %v436_v4 = vpop.f32.mrb[4].mxu1 }
 0x2dc   :  { %v2433_v5 = vmul.f32 0.35355338, %v436_v4  ;;  %v1978_v6 = vpop.f32.mrb[5].mxu1  ;;  %v847_v7 = vsel %vm213_vm9, %v1891_v3, -inf }
 0x2dd   :  { %848 = vmax.xlane.f32.xlu1 %v847_v7 }
 0x2de   :  { %v1892_v8 = vclamps-f32 %v2433_v5, 65000.0 }
 0x2df   :  { %v512_v9 = vpop.f32.mrb[6].mxu1  ;;  %v588_v10 = vpop.f32.mrb[2].mxu0 }
 0x2e0   :  { %v823_v11 = vmul.f32 0.35355338, %v512_v9  ;;  %v824_v12 = vmul.f32 0.35355338, %v588_v10  ;;  %v1983_v13 = vpop.f32.mrb[7].mxu1  ;;  %v1988_v14 = vpop.f32.mrb[3].mxu0 }
 0x2e1   :  { %v850_v15 = vsel %vm213_vm9, %v1892_v8, -inf }
 0x2e2   :  { %v1893_v16 = vclamps-f32 %v823_v11, 65000.0  ;;  %v1894_v17 = vclamps-f32 %v824_v12, 65000.0  ;;  %851 = vmax.xlane.f32.xlu0 %v850_v15 }
 0x2e3   :  { %v664_v18 = vpop.f32.mrb[8].mxu1  ;;  %v740_v19 = vpop.f32.mrb[4].mxu0 }
 0x2e4   :  { %v825_v20 = vmul.f32 0.35355338, %v664_v18  ;;  %v826_v21 = vmul.f32 0.35355338, %v740_v19  ;;  %v1993_v22 = vpop.f32.mrb[9].mxu1  ;;  %v1998_v23 = vpop.f32.mrb[5].mxu0 }
 0x2e5   :  { %v853_v24 = vsel %vm213_vm9, %v1893_v16, -inf  ;;  %v856_v25 = vsel %vm213_vm9, %v1894_v17, -inf }
 0x2e6   :  { %v1895_v26 = vclamps-f32 %v825_v20, 65000.0  ;;  %v1896_v27 = vclamps-f32 %v826_v21, 65000.0  ;;  %854 = vmax.xlane.f32.xlu0 %v853_v24  ;;  %857 = vmax.xlane.f32.xlu1 %v856_v25 }
 0x2e7   :  { %v816_v28 = vpop.f32.mrb[10].mxu1 }
 0x2e8   :  { %v827_v29 = vmul.f32 0.35355338, %v816_v28  ;;  %v2003_v30 = vpop.f32.mrb[11].mxu1  ;;  %v859_v31 = vsel %vm213_vm9, %v1895_v26, -inf  ;;  %v862_v32 = vsel %vm213_vm9, %v1896_v27, -inf }
 0x2ea   :  { %v1897_v33 = vclamps-f32 %v827_v29, 65000.0  ;;  %860 = vmax.xlane.f32.xlu0 %v859_v31  ;;  %863 = vmax.xlane.f32.xlu1 %v862_v32 }
 0x2ec   :  { %v865_v34 = vsel %vm213_vm9, %v1897_v33, -inf }
 0x2ee   :  { %866 = vmax.xlane.f32.xlu0 %v865_v34 }
 0x2fb   :  { %940 = vrot.lane.b32.xlu1 %v2352_v44, %s2253_s11 }
 0x2ff   :  { %1092 = vrot.lane.b32.xlu1 %v2370_v47, %s2253_s11 }
 0x303   :  { %1168 = vrot.lane.b32.xlu1 %v2365_v45, %s2253_s11 }
 0x304   :  { %1016 = vrot.lane.b32.xlu0 %v2367_v46, %s2253_s11  ;;  %v846_v36 = vpop.xlane.xlu0 %845 }
 0x305   :  { %v868_v39 = vsub.f32 %v1890_v62, %v846_v36 }
 0x307   :  { %1320 = vrot.lane.b32.xlu1 %v2374_v48, %s2253_s11  ;;  %v876_v41 = vmul.f32 1.442695, %v868_v39 }
 0x308   :  { %1244 = vrot.lane.b32.xlu0 %v2350_v43, %s2253_s11 }
 0x36a   :  { %v849_v35 = vpop.xlane.xlu1 %848 }
 0x36b   :  { %v869_v37 = vsub.f32 %v1891_v3, %v849_v35 }
 0x36d   :  { %v878_v38 = vmul.f32 1.442695, %v869_v37 }
 0x36f   :  { %2090 = vpow2.f32 %v878_v38  ;;  %v852_v40 = vpop.xlane.xlu0 %851 }
 0x370   :  { %2092 = vpow2.f32 %v876_v41  ;;  %v870_v56 = vsub.f32 %v1892_v8, %v852_v40 }
 0x372   :  { %v880_v63 = vmul.f32 1.442695, %v870_v56 }
 0x373   :  { %v858_v44 = vpop.xlane.xlu1 %857  ;;  %v855_v47 = vpop.xlane.xlu0 %854 }
 0x374   :  { %v872_v45 = vsub.f32 %v1894_v17, %v858_v44  ;;  %v871_v51 = vsub.f32 %v1893_v16, %v855_v47 }
 0x376   :  { %v884_v52 = vmul.f32 1.442695, %v872_v45  ;;  %v882_v46 = vmul.f32 1.442695, %v871_v51 }
 0x377   :  { %v864_v53 = vpop.xlane.xlu1 %863  ;;  %v861_v48 = vpop.xlane.xlu0 %860 }
 0x378   :  { %2094 = vpow2.f32 %v884_v52  ;;  %v874_v54 = vsub.f32 %v1896_v27, %v864_v53  ;;  %v873_v43 = vsub.f32 %v1895_v26, %v861_v48  ;;  %v1580_v52 = vld [vmem:[#allocation7] sm:$0xff] }
 0x379   :  { %v2091_v55 = vpop.eup %2090  ;;  %2096 = vpow2.f32 %v882_v46  ;;  %v1581_v46 = vld [vmem:[#allocation7 + $0x8] sm:$0xff] }
 0x37a   :  { %v888_v57 = vmul.f32 1.442695, %v874_v54  ;;  %v886_v58 = vmul.f32 1.442695, %v873_v43  ;;  %v895_v59 = vsel %vm213_vm9, %v2091_v55, 0.0  ;;  %v2093_v2 = vpop.eup %2092  ;;  %v2063_v48 = vpack.c.bf16 %v1581_v46, %v1580_v52 }
 0x37b   :  { %v941_v60 = vpop.permute.xlu1 %940  ;;  %v867_v61 = vpop.xlane.xlu0 %866  ;;  %896 = vadd.xlane.f32.xlu0 %v895_v59  ;;  %v892_v8 = vsel %vm213_vm9, %v2093_v2, 0.0 }
 0x37c   :  { %v875_v62 = vsub.f32 %v1897_v33, %v867_v61  ;;  %2005 = vmatpush3.msra.mxu0 %v941_v60  ;;  %2098 = vpow2.f32 %v886_v58  ;;  %v1583_v58 = vld [vmem:[#allocation7 + $0x18] sm:$0xff] }
 0x37d   :  { %2014 = vmatprep.subr.mxu0 %v2247_v42  ;;  %2100 = vpow2.f32 %v888_v57  ;;  %v1582_v57 = vld [vmem:[#allocation7 + $0x10] sm:$0xff] }
 0x37e   :  { %v890_v0 = vmul.f32 1.442695, %v875_v62  ;;  %v2067_v59 = vpack.c.bf16 %v1583_v58, %v1582_v57 }
 0x37f   :  { %v1017_v1 = vpop.permute.xlu0 %1016  ;;  %v1093_v16 = vpop.permute.xlu1 %1092 }
 0x380   :  { %2102 = vpow2.f32 %v890_v0  ;;  %2010 = vmatpush3.msra.mxu1 %v1017_v1 }
 0x381   :  { %2019 = vmatprep.subr.mxu1 %v2247_v42  ;;  %2104 = vpow2.f32 %v880_v63 }
 0x382   :  { %v2095_v3 = vpop.eup %2094 }
 0x383   :  { %v2097_v4 = vpop.eup %2096  ;;  %v904_v5 = vsel %vm213_vm9, %v2095_v3, 0.0  ;;  %v1245_v17 = vpop.permute.xlu0 %1244 }
 0x384   :  { %905 = vadd.xlane.f32.xlu1 %v904_v5  ;;  %v901_v6 = vsel %vm213_vm9, %v2097_v4, 0.0  ;;  %v1169_v18 = vpop.permute.xlu1 %1168 }
 0x385   :  { %902 = vadd.xlane.f32.xlu0 %v901_v6 }
 0x386   :  { %v2099_v7 = vpop.eup %2098 }
 0x387   :  { %v2461_v9 = vpop.eup %2100  ;;  %v907_v10 = vsel %vm213_vm9, %v2099_v7, 0.0 }
 0x388   :  { %893 = vadd.xlane.f32.xlu1 %v892_v8  ;;  %v910_v12 = vsel %vm213_vm9, %v2461_v9, 0.0  ;;  %v1321_v20 = vpop.permute.xlu1 %1320 }
 0x389   :  { %908 = vadd.xlane.f32.xlu0 %v907_v10 }
 0x38a   :  { %v2103_v11 = vpop.eup %2102 }
 0x38b   :  { %v913_v13 = vsel %vm213_vm9, %v2103_v11, 0.0  ;;  %v2467_v14 = vpop.eup %2104 }
 0x38c   :  { %911 = vadd.xlane.f32.xlu1 %v910_v12  ;;  %v898_v15 = vsel %vm213_vm9, %v2467_v14, 0.0 }
 0x38d   :  { %914 = vadd.xlane.f32.xlu0 %v913_v13 }
 0x390   :  { %899 = vadd.xlane.f32.xlu1 %v898_v15 }
 0x3a1   :  { %1472 = vrot.lane.b32.xlu1 %v2380_v50, %s2253_s11 }
 0x3a3   :  { %1396 = vrot.lane.b32.xlu0 %v2376_v49, %s2253_s11 }
 0x408   :  { %v897_v19 = vpop.xlane.xlu0 %896 }
 0x409   :  { %2106 = vrcp.f32 %v897_v19 }
 0x411   :  { %v906_v21 = vpop.xlane.xlu1 %905 }
 0x412   :  { %2108 = vrcp.f32 %v906_v21  ;;  %v903_v22 = vpop.xlane.xlu0 %902 }
 0x413   :  { %v2107_v23 = vpop.eup %2106  ;;  %2110 = vrcp.f32 %v903_v22 }
 0x414   :  { %v919_v24 = vmul.f32 %v2107_v23, %v2091_v55 }
 0x415   :  { %v894_v25 = vpop.xlane.xlu1 %893 }
 0x416   :  { %933 = vst.msk [vmem:[#allocation9 + $0x8] sm:$0xff] %vm213_vm9, %v919_v24  ;;  %2112 = vrcp.f32 %v894_v25  ;;  %v909_v50 = vpop.xlane.xlu0 %908  ;;  %2012 = vmatmul.mubr.msk.f32.vlgmr.msra.gmra.mrb[12].mxu1 %vm213_vm9, %v919_v24 }
 0x417   :  { %2114 = vrcp.f32 %v909_v50  ;;  %2020 = vmatpush3.msra.mxu1 %v1169_v18  ;;  %2021 = vmatprep.mubr.msk.f32.mxu1 %vm2250_vm8, %v2247_v42 }
 0x418   :  { %2029 = vmatprep.subr.mxu1 %v2247_v42 }
 0x419   :  { %v912_v49 = vpop.xlane.xlu1 %911 }
 0x41a   :  { %2116 = vrcp.f32 %v912_v49  ;;  %v915_v26 = vpop.xlane.xlu0 %914 }
 0x41b   :  { %2118 = vrcp.f32 %v915_v26 }
 0x41c   :  { %v2109_v27 = vpop.eup %2108 }
 0x41d   :  { %v2111_v28 = vpop.eup %2110  ;;  %v925_v29 = vmul.f32 %v2109_v27, %v2095_v3  ;;  %v900_v30 = vpop.xlane.xlu1 %899 }
 0x41e   :  { %v923_v31 = vmul.f32 %v2111_v28, %v2097_v4  ;;  %2120 = vrcp.f32 %v900_v30  ;;  %v1397_v47 = vpop.permute.xlu0 %1396 }
 0x41f   :  { %936 = vst.msk [vmem:[#allocation9 + $0x20] sm:$0xff] %vm213_vm9, %v925_v29 }
 0x420   :  { %v2113_v32 = vpop.eup %2112  ;;  %935 = vst.msk [vmem:[#allocation9 + $0x18] sm:$0xff] %vm213_vm9, %v923_v31  ;;  %2022 = vmatmul.mubr.msk.f32.vlgmr.msra.gmra.mrb[14].mxu1 %vm213_vm9, %v923_v31 }
 0x421   :  { %v2115_v33 = vpop.eup %2114  ;;  %v917_v34 = vmul.f32 %v2113_v32, %v2093_v2  ;;  %2030 = vmatpush3.msra.mxu1 %v1321_v20  ;;  %2031 = vmatprep.mubr.msk.f32.mxu1 %vm2250_vm8, %v2247_v42  ;;  %v1473_v36 = vpop.permute.xlu1 %1472 }
 0x422   :  { %v927_v35 = vmul.f32 %v2115_v33, %v2099_v7  ;;  %2039 = vmatprep.subr.mxu1 %v2247_v42 }
 0x423   :  { %932 = vst.msk [vmem:[#allocation9] sm:$0xff] %vm213_vm9, %v917_v34  ;;  %2007 = vmatmul.mubr.msk.f32.vlgmr.msra.gmra.mrb[6].mxu0 %vm213_vm9, %v917_v34 }
 0x424   :  { %v2117_v37 = vpop.eup %2116  ;;  %937 = vst.msk [vmem:[#allocation9 + $0x28] sm:$0xff] %vm213_vm9, %v927_v35  ;;  %2015 = vmatpush3.msra.mxu0 %v1093_v16  ;;  %2032 = vmatmul.mubr.msk.f32.vlgmr.msra.gmra.mrb[16].mxu1 %vm213_vm9, %v927_v35 }
 0x425   :  { %v2119_v38 = vpop.eup %2118  ;;  %v929_v39 = vmul.f32 %v2117_v37, %v2461_v9  ;;  %2040 = vmatpush3.msra.mxu1 %v1473_v36  ;;  %2041 = vmatprep.mubr.msk.f32.mxu1 %vm2250_vm8, %v2247_v42 }
 0x426   :  { %v931_v40 = vmul.f32 %v2119_v38, %v2103_v11  ;;  %2016 = vmatprep.mubr.msk.f32.mxu0 %vm2250_vm8, %v2247_v42  ;;  %2024 = vmatprep.subr.mxu0 %v2247_v42 }
 0x427   :  { %938 = vst.msk [vmem:[#allocation9 + $0x30] sm:$0xff] %vm213_vm9, %v929_v39 }
 0x428   :  { %v2121_v41 = vpop.eup %2120  ;;  %939 = vst.msk [vmem:[#allocation9 + $0x38] sm:$0xff] %vm213_vm9, %v931_v40  ;;  %2042 = vmatmul.mubr.msk.f32.vlgmr.msra.gmra.mrb[18].mxu1 %vm213_vm9, %v931_v40 }
 0x429   :  { %v921_v44 = vmul.f32 %v2121_v41, %v2467_v14 }
 0x42b   :  { %934 = vst.msk [vmem:[#allocation9 + $0x10] sm:$0xff] %vm213_vm9, %v921_v44  ;;  %2017 = vmatmul.mubr.msk.f32.vlgmr.msra.gmra.mrb[8].mxu0 %vm213_vm9, %v921_v44 }
 0x42c   :  { %2025 = vmatpush3.msra.mxu0 %v1245_v17  ;;  %2026 = vmatprep.mubr.msk.f32.mxu0 %vm2250_vm8, %v2247_v42 }
 0x42d   :  { %2034 = vmatprep.subr.mxu0 %v2247_v42 }
 0x42f   :  { %2027 = vmatmul.mubr.msk.f32.vlgmr.msra.gmra.mrb[10].mxu0 %vm213_vm9, %v925_v29 }
 0x430   :  { %2035 = vmatpush3.msra.mxu0 %v1397_v47  ;;  %2036 = vmatprep.mubr.msk.f32.mxu0 %vm2250_vm8, %v2247_v42 }
 0x431   :  { %2064 = vmatprep.subr.bf16.mxu0 %v2063_v48 }
 0x433   :  { %2037 = vmatmul.mubr.msk.f32.vlgmr.msra.gmra.mrb[12].mxu0 %vm213_vm9, %v929_v39 }
 0x434   :  { %2066 = vmatpush3.bf16.msra.mxu0 %v2063_v48 }
 0x435   :  { %2068 = vmatprep.subr.bf16.mxu0 %v2067_v59 }
 0x438   :  { %2070 = vmatpush3.bf16.msra.mxu0 %v2067_v59 }
 0x4e9   :  { %v1088_v45 = vpop.f32.mrb[12].mxu1 }
 0x4ea   :  { %1549 = vrot.lane.b32.xlu0 %v1088_v45, %s2242_s29  ;;  %v2013_v51 = vpop.f32.mrb[13].mxu1 }
 0x4f3   :  { %v1240_v53 = vpop.f32.mrb[14].mxu1 }
 0x4f4   :  { %v2023_v54 = vpop.f32.mrb[15].mxu1 }
 0x4f6   :  { %v1012_v43 = vpop.f32.mrb[6].mxu0 }
 0x4f7   :  { %v1392_v55 = vpop.f32.mrb[16].mxu1  ;;  %v2008_v56 = vpop.f32.mrb[7].mxu0 }
 0x4f8   :  { %1566 = vrot.lane.b32.xlu0 %v1392_v55, %s2242_s29  ;;  %v2033_v42 = vpop.f32.mrb[17].mxu1 }
 0x4fb   :  { %v1544_v60 = vpop.f32.mrb[18].mxu1 }
 0x4fc   :  { %v2043_v61 = vpop.f32.mrb[19].mxu1 }
 0x4fe   :  { %v1164_v62 = vpop.f32.mrb[8].mxu0 }
 0x4ff   :  { %1553 = vrot.lane.b32.xlu1 %v1164_v62, %s2254_s12  ;;  %v2018_v63 = vpop.f32.mrb[9].mxu0 }
 0x502   :  { %v1316_v0 = vpop.f32.mrb[10].mxu0 }
 0x503   :  { %v2028_v1 = vpop.f32.mrb[11].mxu0  ;;  %1557 = vrot.lane.b32.xlu1 %v1240_v53, %s2255_s13 }
 0x506   :  { %v1468_v2 = vpop.f32.mrb[12].mxu0 }
 0x507   :  { %1574 = vrot.lane.b32.xlu1 %v1544_v60, %s2255_s13  ;;  %1570 = vrot.lane.b32.xlu0 %v1468_v2, %s2254_s12  ;;  %v2038_v3 = vpop.f32.mrb[13].mxu0 }
 0x55c   :  { %v1550_v4 = vpop.permute.xlu0 %1549 }
 0x55d   :  { %v1560_v6 = vsel %vm213_vm9, %v1012_v43, %v1550_v4 }
 0x56a   :  { %v1567_v7 = vpop.permute.xlu0 %1566 }
 0x56b   :  { %v1577_v11 = vsel %vm213_vm9, %v1316_v0, %v1567_v7 }
 0x571   :  { %v1554_v5 = vpop.permute.xlu1 %1553 }
 0x572   :  { %v1562_v8 = vsel %vm1561_vm10, %v1560_v6, %v1554_v5 }
 0x575   :  { %v1558_v9 = vpop.permute.xlu1 %1557 }
 0x576   :  { %v1564_v10 = vsel %vm1563_vm11, %v1562_v8, %v1558_v9 }
 0x577   :  { %2052 = vmatprep.mubr.msk.f32.mxu0 %vm117_vm7, %v1564_v10 }
 0x579   :  { %v1575_v12 = vpop.permute.xlu1 %1574  ;;  %v1571_v13 = vpop.permute.xlu0 %1570 }
 0x57a   :  { %v1578_v14 = vsel %vm1561_vm10, %v1577_v11, %v1571_v13 }
 0x57b   :  { %v1579_v15 = vsel %vm1563_vm11, %v1578_v14, %v1575_v12 }
 0x57c   :  { %2053 = vmatmul.mubr.msk.f32.vlgmr.msra.gmra.mrb[14].mxu0 %vm117_vm7, %v1579_v15 }
 0x57d   :  { %2199 = shalt.err (!%p2196_p0)
}
 0x57e   :  { %s2200_s20 = scalar_lea.hbm %s2569_s5, 1024 }
 0x57f   :  { %p2201_p1 = scmp.ne.s32.totalorder %s2569_s5, %s2200_s20  ;;  %p2204_p2 = scmp.lt.u32.totalorder %s2200_s20, %s2569_s5 }
 0x581   :  { %p2206_p3 = pnand %p2204_p2, %p2201_p1 }
 0x583   :  { %2209 = shalt.err (!%p2206_p3)
}
 0x584   :  { %1861 = dma.vmem_to_hbm [thread:$0]  %s1856_s15, 1024, %s2569_s5, [#allocation10], %s2241_s28, %s2241_s28, %s2242_s29   ;;  %v2257_v16 = vmov 1966171168   ;;  %v1677_v18 = vlaneseq  ;;  %vm1820_vm12 = vcmask 1040384   ;;  %vm1829_vm13 = vcmask 254976  }
 0x585   :  { %v1675_v17 = vunpack.c.l.s4 %v2257_v16  ;;  %v1906_v21 = vld [vmem:[%s2567_s3] ss:$0 sm:$0xff]  ;;  %s2258_s3 = smov [#allocation8]  }
 0x586   :  { %v1678_v20 = vshrl.u32 %v1677_v18, 7  ;;  %s1843_s5 = sshll.u32 %s2258_s3, 4  ;;  %s1844_s5 = int_to_ptr.vmem [resolvable:$true] %s1843_s5 }
 0x587   :  { %v1676_v19 = vunpack.c.0.s8 %v1675_v17  ;;  %s2210_s28 = scalar_lea.vmem %s1844_s5, 256  ;;  %p2215_p5 = scmp.lt.s32.totalorder %s1844_s5, %s1844_s5 }
 0x588   :  { %v1782_v27 = vsub.s32 0, %v1678_v20  ;;  %p2211_p4 = scmp.ne.s32.totalorder %s1844_s5, %s2210_s28  ;;  %p2216_p6 = scmp.lt.s32.totalorder %s2210_s28, %s2210_s28 }
 0x589   :  { %v1679_v22 = vsub.s32 %v1676_v19, %v1678_v20 }
 0x58a   :  { %p2217_p7 = por %p2216_p6, %p2215_p5 }
 0x58c   :  { %p2218_p8 = pnand %p2217_p7, %p2211_p4 }
 0x64f   :  { %v2054_v23 = vpop.f32.mrb[14].mxu0 }
 0x650   :  { %v1669_v24 = vadd.f32 %v2054_v23, %v1906_v21  ;;  %v1663_v25 = vpop.f32.mrb[15].mxu0 }
 0x651   :  { %v1664_v50 = vadd.f32 %v1906_v21, %v1663_v25 }
 0x652   :  { %v1731_v49 = vcombine.high %v1669_v24, %v1669_v24  ;;  %v1738_v26 = vrot.slane %v1669_v24, %v1679_v22 }
 0x653   :  { %v1673_v28 = vcombine.high %v1664_v50, %v1664_v50  ;;  %v1680_v29 = vrot.slane %v1664_v50, %v1679_v22 }
 0x654   :  { %v1745_v30 = vrot.slane %v1731_v49, %v1679_v22  ;;  %v1746_v31 = vcombine.high %v1738_v26, %v1738_v26  ;;  %v1754_v32 = vrot.slane %v1738_v26, %v1679_v22 }
 0x655   :  { %v1687_v33 = vrot.slane %v1673_v28, %v1679_v22  ;;  %v1688_v34 = vcombine.high %v1680_v29, %v1680_v29  ;;  %v1696_v35 = vrot.slane %v1680_v29, %v1679_v22 }
 0x656   :  { %v1747_v36 = vcombine.high %v1745_v30, %v1745_v30  ;;  %v1761_v37 = vrot.slane %v1745_v30, %v1679_v22  ;;  %v1768_v38 = vrot.slane %v1746_v31, %v1679_v22  ;;  %v1776_v39 = vcombine.high %v1754_v32, %v1754_v32 }
 0x657   :  { %v1783_v40 = vrot.slane %v1754_v32, %v1782_v27  ;;  %v1689_v41 = vcombine.high %v1687_v33, %v1687_v33  ;;  %v1703_v44 = vrot.slane %v1687_v33, %v1679_v22  ;;  %v1710_v47 = vrot.slane %v1688_v34, %v1679_v22 }
 0x658   :  { %v1775_v45 = vrot.slane %v1747_v36, %v1679_v22  ;;  %v1777_v51 = vcombine.high %v1761_v37, %v1761_v37  ;;  %v1778_v52 = vcombine.high %v1768_v38, %v1768_v38  ;;  %v1787_v46 = vrot.slane %v1768_v38, %v1782_v27 }
 0x659   :  { %v1791_v53 = vrot.slane %v1776_v39, %v1782_v27  ;;  %v1799_v48 = vrot.slane %v1761_v37, %v1782_v27  ;;  %v1717_v54 = vrot.slane %v1689_v41, %v1679_v22  ;;  %v1718_v43 = vcombine.high %v1696_v35, %v1696_v35 }
 0x65a   :  { %v1779_v55 = vcombine.high %v1775_v45, %v1775_v45  ;;  %v1795_v56 = vrot.slane %v1778_v52, %v1782_v27  ;;  %v1803_v57 = vrot.slane %v1775_v45, %v1782_v27  ;;  %v1807_v58 = vrot.slane %v1777_v51, %v1782_v27 }
 0x65b   :  { %v1719_v42 = vcombine.high %v1703_v44, %v1703_v44  ;;  %v1720_v59 = vcombine.high %v1710_v47, %v1710_v47  ;;  %v1721_v60 = vcombine.high %v1717_v54, %v1717_v54  ;;  %v1821_v61 = vsel %vm1820_vm12, %v1696_v35, %v1783_v40 }
 0x65c   :  { %v1811_v62 = vrot.slane %v1779_v55, %v1782_v27  ;;  %v1822_v63 = vsel %vm1820_vm12, %v1710_v47, %v1787_v46  ;;  %v1823_v0 = vsel %vm1820_vm12, %v1718_v43, %v1791_v53  ;;  %v1825_v1 = vsel %vm1820_vm12, %v1703_v44, %v1799_v48  ;;  %1830 = vst.msk [vmem:[#allocation8] sm:$0x3] %vm1829_vm13, %v1821_v61 }
 0x65d   :  { %v1824_v2 = vsel %vm1820_vm12, %v1720_v59, %v1795_v56  ;;  %v1826_v3 = vsel %vm1820_vm12, %v1717_v54, %v1803_v57  ;;  %v1827_v4 = vsel %vm1820_vm12, %v1719_v42, %v1807_v58  ;;  %1831 = vst.msk [vmem:[#allocation8 + $0x2] sm:$0x3] %vm1829_vm13, %v1822_v63  ;;  %1832 = vst.msk [vmem:[#allocation8 + $0x4] sm:$0x3] %vm1829_vm13, %v1823_v0 }
 0x65e   :  { %1834 = vst.msk [vmem:[#allocation8 + $0x8] sm:$0x3] %vm1829_vm13, %v1825_v1  ;;  %v1828_v5 = vsel %vm1820_vm12, %v1721_v60, %v1811_v62  ;;  %1833 = vst.msk [vmem:[#allocation8 + $0x6] sm:$0x3] %vm1829_vm13, %v1824_v2 }
 0x65f   :  { %1835 = vst.msk [vmem:[#allocation8 + $0xa] sm:$0x3] %vm1829_vm13, %v1826_v3  ;;  %1836 = vst.msk [vmem:[#allocation8 + $0xc] sm:$0x3] %vm1829_vm13, %v1827_v4 }
 0x660   :  { %1837 = vst.msk [vmem:[#allocation8 + $0xe] sm:$0x3] %vm1829_vm13, %v1828_v5 }
 0x661   :  { %2221 = shalt.err (!%p2218_p8)
}
 0x662   :  { %s2222_s0 = scalar_lea.hbm %s2568_s4, 256 }
 0x663   :  { %p2223_p9 = scmp.ne.s32.totalorder %s2568_s4, %s2222_s0  ;;  %p2226_p10 = scmp.lt.u32.totalorder %s2222_s0, %s2568_s4 }
 0x665   :  { %p2228_p11 = pnand %p2226_p10, %p2223_p9 }
 0x667   :  { %2231 = shalt.err (!%p2228_p11)
}
 0x668   :  { %1849 = dma.vmem_to_hbm [thread:$0]  %s1844_s5, 256, %s2568_s4, [#allocation4], %s2244_s1, %s2244_s1, %s2245_s17  }
 0x669   :  { %2236 = dma.done.wait [#allocation4], 256  }
 0x66a   :  { %2237 = vsyncadd [#allocation4], 4294967040 }
 0x66b   :  { %2238 = dma.done.wait [#allocation10], 1024  }
 0x66c   :  { %2239 = vsyncadd [#allocation10], 4294966272 }
 0x66d   :  { %1868 = vsyncpa [#allocation3], 1 }
 0x66e   :  { %1869 = vsyncpa [#allocation6], 1 }
 0x66f   :  { %1870 = vsyncpa [#allocation4], 1 }
 0x670   :  { %1871 = vsyncpa [#allocation10], 1 }

</bundles_post_ra>
